<compile_context>
chip_gen: v7x
topology: tpu7x:2x2x1
jax: 0.10.0
libtpu: 0.0.40
codegen_flags: <defaults>
</compile_context>

<pallas_src>
import functools

import jax
import jax.numpy as jnp
from jax import lax
from jax.experimental import pallas as pl
from jax.experimental.pallas import tpu as pltpu

EPS = 1e-6                       # args.epsilon in the original module
_VMEM_LIMIT = 32 * 1024 * 1024   # above the 16 MiB v5e default, safe on v7x


def _round_up(x, m):
    return (x + m - 1) // m * m


# --------------------------------------------------------------------------
# Kernel 1: temp2 tiles + segment-sum into a resident (q, N) accumulator.
#   grid = (n_slices [parallel], n_tiles_per_slice [arbitrary])
# --------------------------------------------------------------------------
def _marg_kernel(dst_ref, cav_ref, ct_ref, marg_ref, iota_ref, *, eps):
    @pl.when(pl.program_id(1) == 0)
    def _init():
        marg_ref[...] = jnp.zeros_like(marg_ref)
        # Node-index iota (edge on sublanes, node on lanes), built once per
        # slice and reused every tile.
        iota_ref[...] = lax.broadcasted_iota(jnp.int32, iota_ref.shape, 1)

    # temp2_T tile: (q, TE) = log(C^T @ cav_T + eps)
    temp2_t = jnp.log(
        jnp.dot(ct_ref[...], cav_ref[...], preferred_element_type=jnp.float32)
        + eps)

    # One-hot scatter operator (TE, N), built on-chip: padded edges carry
    # dst == -1 and match no node.  The MXU performs the segment-sum into the
    # lane-dense (q, N) accumulator with zero HBM traffic for the structure.
    onehot = (iota_ref[...] == dst_ref[...]).astype(jnp.float32)   # (TE, N)
    marg_ref[...] += jnp.dot(temp2_t, onehot,
                             preferred_element_type=jnp.float32)


# --------------------------------------------------------------------------
# Kernel 2: cav update (gather-free, tile-aligned, independent tiles).
#   cav_out_T = softmax_over_q( marg_T[:, src] - log(C^T @ cav_T[:, rev] + eps) )
# --------------------------------------------------------------------------
def _cav_kernel(cav_rev_ref, marg_src_ref, ct_ref, cav_out_ref, *, eps):
    t2_rev = jnp.log(
        jnp.dot(ct_ref[...], cav_rev_ref[...],
                preferred_element_type=jnp.float32) + eps)          # (q, TE)
    logits = marg_src_ref[...] - t2_rev
    m = jnp.max(logits, axis=0, keepdims=True)                      # sublane reduce
    e = jnp.exp(logits - m)
    denom = jnp.sum(e, axis=0, keepdims=True)
    # Exact divide: this kernel is HBM-bound, the divide is hidden under DMA.
    cav_out_ref[...] = (e / denom).astype(cav_out_ref.dtype)


def bplayer_forward(marg_i, cav_ij, C, field_i, src, dst, indice_ij,
                    *, eps=EPS, tile_e1=512, tile_e2=8192, n_slices=2):
    """Forward pass of Bplayer.  Returns (marg_i, cav_ij) like the PyTorch module.

    src/dst are per-edge source/destination node indices (the sparse structure
    of A1 / B_); indice_ij maps each edge to its reverse edge.
    """
    del marg_i  # the module overwrites marg_i before any read
    E, q = cav_ij.shape
    N = field_i.shape[0]

    # Lane-dense state layout: state axis (q) on sublanes, edge/node on lanes.
    cav_t = cav_ij.astype(jnp.float32).T          # (q, E)
    c_t = C.astype(jnp.float32).T                 # (q, q)  (C transposed)
    field_t = field_i.astype(jnp.float32).T       # (q, N)

    # ---- pass 1: marg = segment_sum(temp2, dst) + field ---------------------
    te1 = min(_round_up(int(tile_e1), 128), _round_up(E, 128))
    e_pad1 = _round_up(E, te1 * n_slices)
    pad1 = e_pad1 - E
    n_half = e_pad1 // (te1 * n_slices)

    cav_p1 = jnp.pad(cav_t, ((0, 0), (0, pad1)))                 # zero cols -> log(eps), finite
    dst_p1 = jnp.pad(dst.astype(jnp.int32), (0, pad1),
                     constant_values=-1).reshape(e_pad1, 1)      # (E_pad, 1)

    partials = pl.pallas_call(
        functools.partial(_marg_kernel, eps=eps),
        grid=(n_slices, n_half),
        in_specs=[
            pl.BlockSpec((te1, 1), lambda s, i: (s * n_half + i, 0)),   # dst tile
            pl.BlockSpec((q, te1), lambda s, i: (0, s * n_half + i)),   # cav_T tile
            pl.BlockSpec((q, q), lambda s, i: (0, 0)),                  # C^T (resident)
        ],
        out_specs=pl.BlockSpec((None, q, N), lambda s, i: (s, 0, 0)),   # per-slice partial
        out_shape=jax.ShapeDtypeStruct((n_slices, q, N), jnp.float32),
        scratch_shapes=[pltpu.VMEM((te1, N), jnp.int32)],               # cached node iota
        compiler_params=pltpu.CompilerParams(
            dimension_semantics=("parallel", "arbitrary"),
            vmem_limit_bytes=_VMEM_LIMIT),
    )(dst_p1, cav_p1, c_t)

    marg_t = partials.sum(axis=0) + field_t                      # (q, N)

    # ---- glue: fused-pad gathers (single take into padded width) ------------
    te2 = min(_round_up(int(tile_e2), 128), _round_up(E, 128))
    e_pad2 = _round_up(E, te2)
    pad2 = e_pad2 - E
    n_tiles2 = e_pad2 // te2

    rev_pad = jnp.pad(indice_ij.astype(jnp.int32), (0, pad2))    # pad -> edge 0 (sliced off)
    src_pad = jnp.pad(src.astype(jnp.int32), (0, pad2))          # pad -> node 0 (sliced off)
    cav_rev_t = jnp.take(cav_t, rev_pad, axis=1)                 # (q, E_pad2)  cav_T[:, rev]
    marg_src_t = jnp.take(marg_t, src_pad, axis=1)               # (q, E_pad2)  marg_T[:, src]

    # ---- pass 2: cav = softmax(marg[src] - temp2[rev]) ----------------------
    cav_new_t = pl.pallas_call(
        functools.partial(_cav_kernel, eps=eps),
        grid=(n_tiles2,),
        in_specs=[
            pl.BlockSpec((q, te2), lambda i: (0, i)),            # cav_T[:, rev] tile
            pl.BlockSpec((q, te2), lambda i: (0, i)),            # marg_T[:, src] tile
            pl.BlockSpec((q, q), lambda i: (0, 0)),              # C^T (resident)
        ],
        out_specs=pl.BlockSpec((q, te2), lambda i: (0, i)),
        out_shape=jax.ShapeDtypeStruct((q, e_pad2), jnp.float32),
        compiler_params=pltpu.CompilerParams(
            dimension_semantics=("parallel",),
            vmem_limit_bytes=_VMEM_LIMIT),
    )(cav_rev_t, marg_src_t, c_t)

    return marg_t.T, cav_new_t[:, :E].T


# --------------------------------------------------------------------------
# Reference + self-test
# --------------------------------------------------------------------------
def _reference_forward(cav_ij, C, B_dense, field_i, A1_dense, indice_ij, eps=EPS):
    temp2 = jnp.log(cav_ij @ C + eps)
    marg = B_dense @ temp2 + field_i
    cav = jax.nn.softmax(A1_dense @ marg - temp2[indice_ij], axis=1)
    return marg, cav


def _ring_graph(n):
    """Directed ring: edge 2k = k->k+1, edge 2k+1 = k+1->k."""
    src, dst, rev = [], [], []
    for k in range(n):
        src += [k, (k + 1) % n]
        dst += [(k + 1) % n, k]
        rev += [2 * k + 1, 2 * k]
    return (jnp.array(src, jnp.int32), jnp.array(dst, jnp.int32),
            jnp.array(rev, jnp.int32))


if __name__ == "__main__":
    key = jax.random.PRNGKey(0)

    # Configs: tiny padded graph, tiny graph with q=4, and a multi-tile graph
    # exercising both the sliced accumulation and multi-tile kernel 2.
    for (n_nodes, q, te1, te2) in [(8, 8, 512, 8192), (6, 4, 512, 8192),
                                   (200, 8, 128, 256)]:
        e_edges = 2 * n_nodes
        src, dst, indice_ij = _ring_graph(n_nodes)

        key, k1, k2, k3, k4 = jax.random.split(key, 5)
        C = jnp.abs(jax.random.normal(k1, (q, q), jnp.float32)) + 0.1
        field_i = jax.random.normal(k2, (n_nodes, q), jnp.float32)
        marg_i = jax.nn.softmax(jax.random.normal(k3, (n_nodes, q), jnp.float32), axis=1)
        cav_ij = jax.nn.softmax(jax.random.normal(k4, (e_edges, q), jnp.float32), axis=1)

        marg_out, cav_out = bplayer_forward(marg_i, cav_ij, C, field_i,
                                            src, dst, indice_ij,
                                            tile_e1=te1, tile_e2=te2)
        jax.block_until_ready((marg_out, cav_out))

        # Dense 0/1 B_ / A1 built only for the reference check.
        B_dense = jnp.zeros((n_nodes, e_edges), jnp.float32).at[
            dst, jnp.arange(e_edges)].set(1.0)
        A1_dense = jnp.zeros((e_edges, n_nodes), jnp.float32).at[
            jnp.arange(e_edges), src].set(1.0)
        marg_ref, cav_ref = _reference_forward(cav_ij, C, B_dense, field_i,
                                               A1_dense, indice_ij)

        assert marg_out.shape == (n_nodes, q) and cav_out.shape == (e_edges, q)
        assert jnp.allclose(marg_out, marg_ref, atol=1e-4, rtol=1e-4), \
            f"marg mismatch (N={n_nodes}, q={q})"
        assert jnp.allclose(cav_out, cav_ref, atol=1e-4, rtol=1e-4), \
            f"cav mismatch (N={n_nodes}, q={q})"

    print("KERNEL_OK")
</pallas_src>

<mosaic_0001>
module attributes {stable_mosaic.version = 11 : i64} {
  func.func @_marg_kernel(%arg0: i32, %arg1: i32, %arg2: memref<128x1xi32, #tpu.memory_space<vmem>>, %arg3: memref<8x128xf32, #tpu.memory_space<vmem>>, %arg4: memref<8x8xf32, #tpu.memory_space<vmem>>, %arg5: memref<1x8x8xf32, #tpu.memory_space<vmem>>, %arg6: memref<128x8xi32, #tpu.memory_space<vmem>>) attributes {dimension_semantics = [#tpu.dimension_semantics<parallel>, #tpu.dimension_semantics<arbitrary>], iteration_bounds = array<i64: 2, 1>, scalar_prefetch = 0 : i64, scratch_operands = 1 : i64, tpu.core_type = #tpu.core_type<tc>, window_params = [{transform_indices = @transform_0, window_bounds = array<i64: 128, 1>}, {transform_indices = @transform_1, window_bounds = array<i64: 8, 128>}, {pipeline_mode = #tpu.pipeline_mode<synchronous>, transform_indices = @transform_2, window_bounds = array<i64: 8, 8>}, {transform_indices = @transform_3, window_bounds = array<i64: 1, 8, 8>}]} {
    %c0_i32 = arith.constant 0 : i32
    %0 = arith.cmpi eq, %arg1, %c0_i32 : i32
    %1 = arith.extui %0 : i1 to i32
    %c0_i32_0 = arith.constant 0 : i32
    %2 = arith.cmpi ne, %1, %c0_i32_0 : i32
    scf.if %2 {
      %cst_16 = arith.constant 0.000000e+00 : f32
      %22 = vector.broadcast %cst_16 : f32 to vector<8x8xf32>
      %c0_17 = arith.constant 0 : index
      %c0_18 = arith.constant 0 : index
      %c0_19 = arith.constant 0 : index
      %23 = vector.load %arg5[%c0_17, %c0_18, %c0_19] : memref<1x8x8xf32, #tpu.memory_space<vmem>>, vector<1x8x8xf32>
      %24 = vector.shape_cast %23 : vector<1x8x8xf32> to vector<8x8xf32>
      %25 = vector.shape_cast %22 : vector<8x8xf32> to vector<1x8x8xf32>
      tpu.vector_store %arg5[%c0_17, %c0_18, %c0_19], %25 {strides = array<i32>} : memref<1x8x8xf32, #tpu.memory_space<vmem>>, vector<1x8x8xf32>,
      %26 = tpu.iota {dimensions = array<i32: 1>} : vector<128x8xi32>
      %c0_20 = arith.constant 0 : index
      %c0_21 = arith.constant 0 : index
      %27 = vector.load %arg6[%c0_20, %c0_21] : memref<128x8xi32, #tpu.memory_space<vmem>>, vector<128x8xi32>
      tpu.vector_store %arg6[%c0_20, %c0_21], %26 {strides = array<i32>} : memref<128x8xi32, #tpu.memory_space<vmem>>, vector<128x8xi32>,
    } else {
    }
    %c0 = arith.constant 0 : index
    %c0_1 = arith.constant 0 : index
    %3 = vector.load %arg4[%c0, %c0_1] : memref<8x8xf32, #tpu.memory_space<vmem>>, vector<8x8xf32>
    %c0_2 = arith.constant 0 : index
    %c0_3 = arith.constant 0 : index
    %4 = vector.load %arg3[%c0_2, %c0_3] : memref<8x128xf32, #tpu.memory_space<vmem>>, vector<8x128xf32>
    %cst = arith.constant dense<0.000000e+00> : vector<8x128xf32>
    %5 = tpu.matmul %3, %4, %cst {dimension_numbers = #tpu.dot_dimension_numbers<[1], [0], [0], [1], [0, 0, 1, 1], [], []>} : vector<8x8xf32>, vector<8x128xf32>, vector<8x128xf32> -> vector<8x128xf32>
    %cst_4 = arith.constant 9.99999997E-7 : f32
    %6 = vector.broadcast %cst_4 : f32 to vector<8x128xf32>
    %7 = arith.addf %5, %6 : vector<8x128xf32>
    %8 = math.log %7 : vector<8x128xf32>
    %c0_5 = arith.constant 0 : index
    %c0_6 = arith.constant 0 : index
    %9 = vector.load %arg6[%c0_5, %c0_6] : memref<128x8xi32, #tpu.memory_space<vmem>>, vector<128x8xi32>
    %c0_7 = arith.constant 0 : index
    %c0_8 = arith.constant 0 : index
    %10 = vector.load %arg2[%c0_7, %c0_8] : memref<128x1xi32, #tpu.memory_space<vmem>>, vector<128x1xi32>
    %11 = vector.broadcast %10 : vector<128x1xi32> to vector<128x8xi32>
    %12 = arith.cmpi eq, %9, %11 : vector<128x8xi32>
    %13 = arith.extui %12 : vector<128x8xi1> to vector<128x8xi32>
    %14 = arith.sitofp %13 : vector<128x8xi32> to vector<128x8xf32>
    %c0_9 = arith.constant 0 : index
    %c0_10 = arith.constant 0 : index
    %c0_11 = arith.constant 0 : index
    %15 = vector.load %arg5[%c0_9, %c0_10, %c0_11] : memref<1x8x8xf32, #tpu.memory_space<vmem>>, vector<1x8x8xf32>
    %16 = vector.shape_cast %15 : vector<1x8x8xf32> to vector<8x8xf32>
    %cst_12 = arith.constant dense<0.000000e+00> : vector<8x8xf32>
    %17 = tpu.matmul %8, %14, %cst_12 {dimension_numbers = #tpu.dot_dimension_numbers<[1], [0], [0], [1], [0, 0, 1, 1], [], []>} : vector<8x128xf32>, vector<128x8xf32>, vector<8x8xf32> -> vector<8x8xf32>
    %18 = arith.addf %16, %17 : vector<8x8xf32>
    %c0_13 = arith.constant 0 : index
    %c0_14 = arith.constant 0 : index
    %c0_15 = arith.constant 0 : index
    %19 = vector.load %arg5[%c0_13, %c0_14, %c0_15] : memref<1x8x8xf32, #tpu.memory_space<vmem>>, vector<1x8x8xf32>
    %20 = vector.shape_cast %19 : vector<1x8x8xf32> to vector<8x8xf32>
    %21 = vector.shape_cast %18 : vector<8x8xf32> to vector<1x8x8xf32>
    tpu.vector_store %arg5[%c0_13, %c0_14, %c0_15], %21 {strides = array<i32>} : memref<1x8x8xf32, #tpu.memory_space<vmem>>, vector<1x8x8xf32>,
    return
  }
  func.func @transform_0(%arg0: i32, %arg1: i32) -> (i32, i32) {
    %c1_i32 = arith.constant 1 : i32
    %0 = arith.muli %arg0, %c1_i32 : i32
    %1 = arith.addi %0, %arg1 : i32
    %c0_i32 = arith.constant 0 : i32
    %c0_i32_0 = arith.constant 0 : i32
    return %1, %c0_i32 : i32, i32
  }
  func.func @transform_1(%arg0: i32, %arg1: i32) -> (i32, i32) {
    %c1_i32 = arith.constant 1 : i32
    %0 = arith.muli %arg0, %c1_i32 : i32
    %1 = arith.addi %0, %arg1 : i32
    %c0_i32 = arith.constant 0 : i32
    %c0_i32_0 = arith.constant 0 : i32
    return %c0_i32, %1 : i32, i32
  }
  func.func @transform_2(%arg0: i32, %arg1: i32) -> (i32, i32) {
    %c0_i32 = arith.constant 0 : i32
    %c0_i32_0 = arith.constant 0 : i32
    %c0_i32_1 = arith.constant 0 : i32
    return %c0_i32, %c0_i32_0 : i32, i32
  }
  func.func @transform_3(%arg0: i32, %arg1: i32) -> (i32, i32, i32) {
    %c0_i32 = arith.constant 0 : i32
    %c0_i32_0 = arith.constant 0 : i32
    %c0_i32_1 = arith.constant 0 : i32
    return %arg0, %c0_i32, %c0_i32_0 : i32, i32, i32
  }
}

</mosaic_0001>

<bundles_post_ra>
// kernel: tpu_custom_call.1
= control target key start
LH: loop header
LB: loop body
LE: loop exit
PB: predicated region body
PF: predicated region fallthrough
CT: control target
= control target key end

     0   :  { %8 = vsyncpa [#allocation4], 0  ;;  %s1097_s0 = inlined_call_operand.vmem [shape: s32[256,1], index: 0, kind: input, shape index: {}]   ;;  %s1098_s1 = inlined_call_operand.vmem [shape: f32[8,256], index: 1, kind: input, shape index: {}]   ;;  %s1099_s2 = inlined_call_operand.vmem [shape: f32[8,8], index: 2, kind: input, shape index: {}]   ;;  %s1100_s3 = inlined_call_operand.hbm [shape: f32[2,8,8], index: 3, kind: output, shape index: {}]  }
   0x1   :  { %10 = vsyncpa [#allocation4 + $0x1], 0  ;;  %s909_s12 = smov 0   ;;  %s911_s13 = smov 0  }
   0x2   :  { %s913_s14 = smov 0   ;;  %s915_s15 = smov 0  }
   0x3   :  { %s917_s16 = smov 0   ;;  %s919_s17 = smov 0  }
   0x4 LB: > { %s610_s18 = sadd.s32 4294967295, %s881_s17   ;;  %s611_s19 = sadd.s32 4294967294, %s881_s17   ;;  %s881_s17 = sphi %s919_s17, %s16_s17   ;;  %s877_s16 = sphi %s917_s16, %s1108_s16   ;;  %s873_s15 = sphi %s915_s15, %s1107_s15   ;;  %s869_s14 = sphi %s913_s14, %s1106_s14   ;;  %s865_s13 = sphi %s911_s13, %s1105_s13   ;;  %s861_s12 = sphi %s909_s12, %s1104_s12  }
   0x5   : > { %s28_s20 = sadd.s32 1, %s877_s16  ;;  %s112_s21 = sadd.s32 1, %s869_s14 }
   0x6   : > { %p30_p0 = scmp.ge.s32.totalorder %s28_s20, 2  ;;  %p122_p1 = scmp.ne.s32.totalorder %s869_s14, %s865_s13 }
   0x7   : > { %p123_p2 = scmp.eq.s32.totalorder %s610_s18, 1  ;;  %p128_p3 = scmp.ne.s32.totalorder %s865_s13, %s861_s12 }
   0x8   : > { %s1110_s20 = smov (%p30_p0, %s28_s20), 0  ;;  %p129_p5 = scmp.eq.s32.totalorder %s611_s19, 1 }
   0x9   : > { %p949_p4 = por %p123_p2, %p122_p1  ;;  %s109_s23 = ssub.s32 %s877_s16, %s1110_s20 }
   0xa   : > { %p614_p6 = scmp.ge.s32.totalorder %s881_s17, 1  ;;  %p110_p7 = scmp.eq.s32.totalorder %s109_s23, 0 }
   0xb   : > { %p956_p8 = por %p129_p5, %p128_p3  ;;  %p170_p9 = scmp.lt.s32.totalorder %s881_s17, 3 }
   0xc   : > { %s962_s25 = scalar_select %p110_p7, %s869_s14, %s112_s21  }
   0xd   : > { %p171_p10 = pnand %p614_p6, %p170_p9 }
   0xe   : > { %p209_p11 = scmp.lt.s32.totalorder (!%p171_p10), %s873_s15, 1  ;;  %v883_v0 = vmov (!%p171_p10), 0.0   ;;  %vm884_vm0 = vmmov (!%p171_p10), 0   ;;  %s616_s26 = sshll.u32 (!%p171_p10), %s873_s15, 4  ;;  %v220_v1 = vlaneseq (!%p171_p10)  ;;  %v885_v2 = vmov (!%p171_p10), 0   ;;  %v238_v4 = vld [vmem:[%s1099_s2] sm:$0xff] (!%p171_p10) }
   0xf   : > { %174 = sbr.rel (%p171_p10) target bundleno = 483 (0x1e3), region = 32  ;;  %675 = vmatprep.subr.mxu0 (!%p171_p10), %v883_v0  ;;  %677 = vmatprep.mubr.msk.f32.mxu0 (!%p171_p10), %vm884_vm0, %v883_v0  ;;  %p971_p12 = scmp.lt.s32.totalorder (!%p171_p10), %s616_s26, 31  ;;  %vm218_vm1 = vcmask (!%p171_p10), 64512   ;;  %v886_v12 = vmov (!%p171_p10), 0.0|0.0   ;;  %v887_v33 = vmov (!%p171_p10), 1.0|1.0  }
  0x10   : > { %799 = vset.pattern.permute.xlu0 (!%p171_p10), %v885_v2  ;;  %800 = vset.pattern.permute.xlu1 (!%p171_p10), %v885_v2  ;;  %v221_v3 = vand.u32 (!%p171_p10), 127, %v220_v1  ;;  %s197_s18 = sand.u32 (!%p171_p10), 1, %s865_s13   ;;  %s653_s23 = sshll.u32 (!%p171_p10), %s873_s15, 7 }
  0x11   : > { %712 = vmatprep.mubr.msk.f32.mxu1 (!%p171_p10), %vm884_vm0, %v883_v0  ;;  %715 = vmatprep.subr.bf16.mxu1 (!%p171_p10), %v886_v12  ;;  %s615_s19 = sshll.u32 (!%p171_p10), %s197_s18, 3  ;;  %s518_s30 = scalar_lea.sflag (!%p171_p10), [#allocation4], %s197_s18 }
  0x12   : > { %222 = vst.msk [vmem:[#allocation2] sm:$0xff] (!%p171_p10), %vm218_vm1, %v221_v3  ;;  %223 = vst.msk [vmem:[#allocation2 + $0x8] sm:$0xff] (!%p171_p10), %vm218_vm1, %v221_v3  ;;  %s1028_s21 = scalar_lea.vmem (!%p171_p10), [#allocation3], %s615_s19 }
  0x13   : > { %224 = vst.msk [vmem:[#allocation2 + $0x10] sm:$0xff] (!%p171_p10), %vm218_vm1, %v221_v3  ;;  %225 = vst.msk [vmem:[#allocation2 + $0x18] sm:$0xff] (!%p171_p10), %vm218_vm1, %v221_v3 }
  0x14   : > { %226 = vst.msk [vmem:[#allocation2 + $0x20] sm:$0xff] (!%p171_p10), %vm218_vm1, %v221_v3  ;;  %227 = vst.msk [vmem:[#allocation2 + $0x28] sm:$0xff] (!%p171_p10), %vm218_vm1, %v221_v3 }
  0x15   : > { %228 = vst.msk [vmem:[#allocation2 + $0x30] sm:$0xff] (!%p171_p10), %vm218_vm1, %v221_v3  ;;  %229 = vst.msk [vmem:[#allocation2 + $0x38] sm:$0xff] (!%p171_p10), %vm218_vm1, %v221_v3 }
  0x16   : > { %s210_s27 = scalar_select %p209_p11, %s873_s15, 1  ;;  %230 = vst.msk [vmem:[#allocation2 + $0x40] sm:$0xff] %vm218_vm1, %v221_v3  ;;  %231 = vst.msk [vmem:[#allocation2 + $0x48] sm:$0xff] %vm218_vm1, %v221_v3 }
  0x17   : > { %232 = vst.msk [vmem:[#allocation2 + $0x50] sm:$0xff] %vm218_vm1, %v221_v3  ;;  %233 = vst.msk [vmem:[#allocation2 + $0x58] sm:$0xff] %vm218_vm1, %v221_v3  ;;  %s1112_s26 = smov (!%p971_p12, %s616_s26), 31  ;;  %s888_s15 = smov [#allocation3]  }
  0x18   : > { %s618_s29 = sshll.u32 %s210_s27, 3  ;;  %234 = vst.msk [vmem:[#allocation2 + $0x60] sm:$0xff] %vm218_vm1, %v221_v3  ;;  %235 = vst.msk [vmem:[#allocation2 + $0x68] sm:$0xff] %vm218_vm1, %v221_v3  ;;  %s617_s8 = sshll.u32 %s1112_s26, 3 }
  0x19   : > { %s212_s5 = scalar_lea.vmem %s1098_s1, %s618_s29  ;;  %236 = vst.msk [vmem:[#allocation2 + $0x70] sm:$0xff] %vm218_vm1, %v221_v3  ;;  %237 = vst.msk [vmem:[#allocation2 + $0x78] sm:$0xff] %vm218_vm1, %v221_v3  ;;  %s1006_s11 = scalar_lea.vmem %s1097_s0, %s617_s8  ;;  %v316_v23 = vld [vmem:[#allocation2] sm:$0xff]  ;;  %v317_v27 = vld [vmem:[#allocation2 + $0x8] sm:$0xff] }
  0x1a   : > { %v239_v5 = vld [vmem:[%s212_s5] sm:$0xff]  ;;  %v334_v7 = vld [vmem:[%s1006_s11 + $0x10] sm:$0xff]  ;;  %v333_v8 = vld [vmem:[%s1006_s11 + $0x8] sm:$0xff]  ;;  %219 = vst.msk [vmem:[%s1028_s21] sm:$0xff] %vm218_vm1, %v883_v0  ;;  %s531_s26 = sshll.u32 %s1028_s21, 4  ;;  %s1046_s29 = scalar_lea.hbm %s1100_s3, %s653_s23  ;;  %s1048_s26 = int_to_ptr.vmem [resolvable:$true] %s531_s26 }
  0x1b   : > { %676 = vmatpush3.msra.mxu0 %v239_v5  ;;  %v332_v6 = vld [vmem:[%s1006_s11] sm:$0xff]  ;;  %355 = vperm.xlu1 %800, %v334_v7   ;;  %v335_v9 = vld [vmem:[%s1006_s11 + $0x18] sm:$0xff]  ;;  %v337_v10 = vld [vmem:[%s1006_s11 + $0x28] sm:$0xff]  ;;  %s803_s4 = scalar_lea.vmem %s1048_s26, 128  ;;  %s807_s5 = sshll.u32 %s888_s15, 4  ;;  %s808_s5 = int_to_ptr.vmem [resolvable:$false] %s807_s5 }
  0x1c   : > { %678 = vmatmul.mubr.msk.f32.vlgmr.msra.gmra.mrb[0].mxu0 %vm218_vm1, %v238_v4  ;;  %349 = vperm.xlu0 %799, %v332_v6   ;;  %v336_v11 = vld [vmem:[%s1006_s11 + $0x20] sm:$0xff]  ;;  %v339_v13 = vld [vmem:[%s1006_s11 + $0x38] sm:$0xff]  ;;  %v338_v14 = vld [vmem:[%s1006_s11 + $0x30] sm:$0xff]  ;;  %p804_p13 = scmp.ne.s32.totalorder %s1048_s26, %s803_s4  ;;  %s809_s6 = scalar_lea.vmem %s808_s5, 256 }
  0x1d   : > { %v341_v15 = vld [vmem:[%s1006_s11 + $0x48] sm:$0xff]  ;;  %v340_v16 = vld [vmem:[%s1006_s11 + $0x40] sm:$0xff]  ;;  %v343_v17 = vld [vmem:[%s1006_s11 + $0x58] sm:$0xff]  ;;  %p810_p2 = scmp.lt.s32.totalorder %s1048_s26, %s808_s5  ;;  %p811_p3 = scmp.lt.s32.totalorder %s809_s6, %s803_s4 }
  0x1e   : > { %v342_v18 = vld [vmem:[%s1006_s11 + $0x50] sm:$0xff]  ;;  %v345_v19 = vld [vmem:[%s1006_s11 + $0x68] sm:$0xff]  ;;  %v344_v20 = vld [vmem:[%s1006_s11 + $0x60] sm:$0xff]  ;;  %p805_p0 = pnand %p804_p13, %p949_p4 }
  0x1f   : > { %358 = vperm.xlu1 %800, %v335_v9   ;;  %v347_v21 = vld [vmem:[%s1006_s11 + $0x78] sm:$0xff]  ;;  %v346_v22 = vld [vmem:[%s1006_s11 + $0x70] sm:$0xff]  ;;  %v318_v26 = vld [vmem:[#allocation2 + $0x10] sm:$0xff]  ;;  %p812_p5 = por %p811_p3, %p810_p2 }
  0x20   : > { %352 = vperm.xlu0 %799, %v333_v8   ;;  %v319_v28 = vld [vmem:[#allocation2 + $0x18] sm:$0xff]  ;;  %v321_v31 = vld [vmem:[#allocation2 + $0x28] sm:$0xff]  ;;  %v320_v32 = vld [vmem:[#allocation2 + $0x20] sm:$0xff]  ;;  %p806_p1 = pneg %p805_p0 }
  0x21   : > { %v323_v36 = vld [vmem:[#allocation2 + $0x38] sm:$0xff]  ;;  %v322_v37 = vld [vmem:[#allocation2 + $0x30] sm:$0xff]  ;;  %v325_v40 = vld [vmem:[#allocation2 + $0x48] sm:$0xff] }
  0x22   : > { %v324_v41 = vld [vmem:[#allocation2 + $0x40] sm:$0xff]  ;;  %v327_v44 = vld [vmem:[#allocation2 + $0x58] sm:$0xff]  ;;  %v326_v45 = vld [vmem:[#allocation2 + $0x50] sm:$0xff]  ;;  %p813_p6 = pnand %p812_p5, %p806_p1 }
  0x23   : > { %364 = vperm.xlu1 %800, %v337_v10   ;;  %v329_v48 = vld [vmem:[#allocation2 + $0x68] sm:$0xff]  ;;  %v328_v49 = vld [vmem:[#allocation2 + $0x60] sm:$0xff]  ;;  %v331_v52 = vld [vmem:[#allocation2 + $0x78] sm:$0xff] }
  0x24   : > { %361 = vperm.xlu0 %799, %v336_v11   ;;  %v330_v53 = vld [vmem:[#allocation2 + $0x70] sm:$0xff]  ;;  %v444_v61 = vld [vmem:[%s1028_s21] sm:$0xff] }
  0x27   : > { %370 = vperm.xlu1 %800, %v339_v13  }
  0x28   : > { %367 = vperm.xlu0 %799, %v338_v14  }
  0x2b   : > { %376 = vperm.xlu1 %800, %v341_v15  }
  0x2c   : > { %373 = vperm.xlu0 %799, %v340_v16  }
  0x2f   : > { %382 = vperm.xlu1 %800, %v343_v17  }
  0x30   : > { %379 = vperm.xlu0 %799, %v342_v18  }
  0x33   : > { %388 = vperm.xlu1 %800, %v345_v19  }
  0x34   : > { %385 = vperm.xlu0 %799, %v344_v20  }
  0x37   : > { %394 = vperm.xlu1 %800, %v347_v21  }
  0x38   : > { %391 = vperm.xlu0 %799, %v346_v22  }
  0x9a   : > { %v356_v25 = vpop.permute.xlu1 %355 }
  0x9b   : > { %v350_v24 = vpop.permute.xlu0 %349  ;;  %vm398_vm3 = vcmp.eq.s32.totalorder %v318_v26, %v356_v25 }
  0x9c   : > { %vm396_vm2 = vcmp.eq.s32.totalorder %v316_v23, %v350_v24 }
  0x9e   : > { %v359_v30 = vpop.permute.xlu1 %358 }
  0x9f   : > { %v353_v29 = vpop.permute.xlu0 %352  ;;  %vm399_vm5 = vcmp.eq.s32.totalorder %v319_v28, %v359_v30 }
  0xa0   : > { %vm397_vm4 = vcmp.eq.s32.totalorder %v317_v27, %v353_v29  ;;  %vm719_vm7 = vmpackc.low %vm399_vm5, %vm398_vm3 }
  0xa1   : > { %vm716_vm6 = vmpackc.low %vm397_vm4, %vm396_vm2 }
  0xa2   : > { %717 = vmatpush3.bf16.msk.msra.mxu1 %vm716_vm6, %v887_v33  ;;  %v365_v34 = vpop.permute.xlu1 %364 }
  0xa3   : > { %718 = vmatprep.subr.bf16.mxu1 %v886_v12  ;;  %v362_v35 = vpop.permute.xlu0 %361  ;;  %vm401_vm8 = vcmp.eq.s32.totalorder %v321_v31, %v365_v34 }
  0xa4   : > { %vm400_vm9 = vcmp.eq.s32.totalorder %v320_v32, %v362_v35 }
  0xa5   : > { %vm722_vm10 = vmpackc.low %vm401_vm8, %vm400_vm9 }
  0xa6   : > { %720 = vmatpush3.bf16.msk.msra.mxu1 %vm719_vm7, %v887_v33  ;;  %v371_v38 = vpop.permute.xlu1 %370 }
  0xa7   : > { %721 = vmatprep.subr.bf16.mxu1 %v886_v12  ;;  %v368_v39 = vpop.permute.xlu0 %367  ;;  %vm403_vm11 = vcmp.eq.s32.totalorder %v323_v36, %v371_v38 }
  0xa8   : > { %vm402_vm12 = vcmp.eq.s32.totalorder %v322_v37, %v368_v39 }
  0xa9   : > { %vm725_vm13 = vmpackc.low %vm403_vm11, %vm402_vm12 }
  0xaa   : > { %723 = vmatpush3.bf16.msk.msra.mxu1 %vm722_vm10, %v887_v33  ;;  %v377_v42 = vpop.permute.xlu1 %376 }
  0xab   : > { %724 = vmatprep.subr.bf16.mxu1 %v886_v12  ;;  %v374_v43 = vpop.permute.xlu0 %373  ;;  %vm405_vm14 = vcmp.eq.s32.totalorder %v325_v40, %v377_v42 }
  0xac   : > { %vm404_vm15 = vcmp.eq.s32.totalorder %v324_v41, %v374_v43 }
  0xad   : > { %vm728_vm0 = vmpackc.low %vm405_vm14, %vm404_vm15 }
  0xae   : > { %726 = vmatpush3.bf16.msk.msra.mxu1 %vm725_vm13, %v887_v33  ;;  %v383_v46 = vpop.permute.xlu1 %382 }
  0xaf   : > { %727 = vmatprep.subr.bf16.mxu1 %v886_v12  ;;  %v380_v47 = vpop.permute.xlu0 %379  ;;  %vm407_vm2 = vcmp.eq.s32.totalorder %v327_v44, %v383_v46 }
  0xb0   : > { %vm406_vm3 = vcmp.eq.s32.totalorder %v326_v45, %v380_v47 }
  0xb1   : > { %vm731_vm4 = vmpackc.low %vm407_vm2, %vm406_vm3 }
  0xb2   : > { %729 = vmatpush3.bf16.msk.msra.mxu1 %vm728_vm0, %v887_v33  ;;  %v389_v50 = vpop.permute.xlu1 %388 }
  0xb3   : > { %730 = vmatprep.subr.bf16.mxu1 %v886_v12  ;;  %v386_v51 = vpop.permute.xlu0 %385  ;;  %vm409_vm5 = vcmp.eq.s32.totalorder %v329_v48, %v389_v50 }
  0xb4   : > { %vm408_vm6 = vcmp.eq.s32.totalorder %v328_v49, %v386_v51 }
  0xb5   : > { %vm734_vm7 = vmpackc.low %vm409_vm5, %vm408_vm6 }
  0xb6   : > { %732 = vmatpush3.bf16.msk.msra.mxu1 %vm731_vm4, %v887_v33  ;;  %v395_v54 = vpop.permute.xlu1 %394 }
  0xb7   : > { %733 = vmatprep.subr.bf16.mxu1 %v886_v12  ;;  %v392_v55 = vpop.permute.xlu0 %391  ;;  %vm411_vm8 = vcmp.eq.s32.totalorder %v331_v52, %v395_v54 }
  0xb8   : > { %vm410_vm9 = vcmp.eq.s32.totalorder %v330_v53, %v392_v55 }
  0xb9   : > { %vm737_vm10 = vmpackc.low %vm411_vm8, %vm410_vm9 }
  0xba   : > { %735 = vmatpush3.bf16.msk.msra.mxu1 %vm734_vm7, %v887_v33 }
  0xbb   : > { %736 = vmatprep.subr.bf16.mxu1 %v886_v12 }
  0xbe   : > { %738 = vmatpush3.bf16.msk.msra.mxu1 %vm737_vm10, %v887_v33 }
  0xef   : > { %v310_v56 = vpop.f32.mrb[0].mxu0 }
  0xf0   : > { %v311_v57 = vadd.f32 1e-06, %v310_v56  ;;  %v679_v58 = vpop.f32.mrb[1].mxu0 }
  0xf2   : > { %801 = vlog2.f32 %v311_v57 }
  0xfc   : > { %v802_v59 = vpop.eup %801 }
  0xfd   : > { %v315_v60 = vmul.f32 0.6931472, %v802_v59 }
  0xff   : > { %713 = vmatmul.mubr.f32.vlgmr.msra.gmra.mrb[0].mxu1 %v315_v60 }
 0x1d2   : > { %v511_v62 = vpop.f32.mrb[0].mxu1 }
 0x1d3   : > { %v515_v63 = vadd.f32 %v511_v62, %v444_v61  ;;  %v714_v0 = vpop.f32.mrb[1].mxu1 }
 0x1d5   : > { %516 = vst.msk [vmem:[%s1028_s21] sm:$0xff] %vm218_vm1, %v515_v63 }
 0x1d6   : > { %816 = shalt.err (!%p813_p6)
}
 0x1d7   : > { %s817_s7 = scalar_lea.hbm %s1046_s29, 128  ;;  %s821_s10 = scalar_lea.hbm %s1100_s3, 256 }
 0x1d8   : > { %p818_p7 = scmp.ne.s32.totalorder %s1046_s29, %s817_s7  ;;  %p822_p11 = scmp.lt.u32.totalorder %s1046_s29, %s1100_s3 }
 0x1d9   : > { %p823_p12 = scmp.lt.u32.totalorder %s821_s10, %s817_s7  ;;  %p825_p0 = scmp.lt.u32.totalorder %s817_s7, %s1046_s29 }
 0x1da   : > { %p819_p9 = pnand %p818_p7, %p949_p4 }
 0x1db   : > { %p824_p13 = por %p823_p12, %p822_p11 }
 0x1dc   : > { %p820_p10 = pneg %p819_p9 }
 0x1dd   : > { %p826_p1 = por %p825_p0, %p824_p13 }
 0x1df   : > { %p827_p2 = pnand %p826_p1, %p820_p10 }
 0x1e1   : > { %830 = shalt.err (!%p827_p2)
}
 0x1e2   : > { %739 = dma.vmem_to_hbm [thread:$0]  (%p949_p4), %s1048_s26, 128, %s1046_s29, %s518_s30  }
 0x1e3 PF: > { %p745_p3 = scmp.ge.s32.totalorder %s881_s17, 2  ;;  %s543_s19 = sand.u32 1, %s861_s12  }
 0x1e4   : > { %s544_s21 = scalar_lea.sflag [#allocation4], %s543_s19 }
 0x1e5   : > { %p742_p5 = pnand %p745_p3, %p956_p8 }
 0x1e7   : > { %856 = dma.done.wait (!%p742_p5), %s544_s21, 128  }
 0x1e8   : > { %858 = vsyncadd (!%p742_p5), %s544_s21, 4294967168  ;;  %s16_s17 = sadd.s32 1, %s881_s17   ;;  %s1104_s12 = smov %s865_s13 }
 0x1e9   : > { %p13_p6 = scmp.ge.s32.totalorder %s16_s17, 4   ;;  %s1105_s13 = smov %s869_s14 }
 0x1ea   : > { %s1106_s14 = smov %s962_s25  ;;  %s1107_s15 = smov %s877_s16 }
 0x1eb   : > { %s1108_s16 = smov %s1110_s20  ;;  %15 = sbr.rel (!%p13_p6) target bundleno = 4 (0x4), region = 74 }
 0x1f2   :  { %549 = vsyncpa [#allocation4], 1 }
 0x1f3   :  { %551 = vsyncpa [#allocation4 + $0x1], 1 }

</bundles_post_ra>
